<compile_context>
chip_gen: v6e
topology: v6e:2x2x1
jax: 0.10.0
libtpu: 0.0.40
codegen_flags: <defaults>
</compile_context>

<pallas_src>
import jax
import jax.numpy as jnp
from jax.experimental import pallas as pl
from jax.experimental.pallas import tpu as pltpu


# --------------------------------------------------------------------------------------
# Fused kernel: per batch element, compute both attentions and the gated residual ReLU.
# x is presented lane-dense as (C, H*W).
# --------------------------------------------------------------------------------------
def _gap_kernel(x_ref, m_ref, bspa_ref, w1_ref, w2_ref, o_ref):
    x = x_ref[0]                                            # (C, HW) f32

    # ---- channel attention: spatial avg/max pool -> shared MLP -> sigmoid gate ----
    p_avg = jnp.mean(x, axis=1, keepdims=True)              # (C, 1)
    p_max = jnp.max(x, axis=1, keepdims=True)               # (C, 1)

    def _mlp(p):                                            # (C,1) -> (C,1)
        h = jnp.maximum(
            jnp.dot(w1_ref[...], p, preferred_element_type=jnp.float32), 0.0)
        return jnp.dot(w2_ref[...], h, preferred_element_type=jnp.float32)

    z_cha = _mlp(p_avg) + _mlp(p_max)                       # (C, 1)
    cha = 1.0 / (1.0 + jnp.exp(-z_cha))                     # sigmoid, (C, 1)

    # ---- spatial attention: channel avg/max pool -> 7x7 conv (as one matmul) -> sigmoid ----
    s_avg = jnp.mean(x, axis=0, keepdims=True)              # (1, HW)
    s_max = jnp.max(x, axis=0, keepdims=True)               # (1, HW)
    s = jnp.concatenate([s_avg, s_max], axis=1)             # (1, 2*HW), lane-aligned concat
    z_spa = jnp.dot(s, m_ref[...],
                    preferred_element_type=jnp.float32) + bspa_ref[...]   # (1, HW)
    spa = 1.0 / (1.0 + jnp.exp(-z_spa))                     # sigmoid, (1, HW)

    # ---- out = relu(x + x*spa + x*cha) = relu(x * (1 + spa + cha)) ----
    o_ref[0] = jnp.maximum(x * (1.0 + spa + cha), 0.0).astype(o_ref.dtype)


# --------------------------------------------------------------------------------------
# Weight preprocessing: fold the 7x7 (2 -> 1 channel) conv into a Toeplitz matrix so the
# in-kernel spatial conv is a single lane-dense MXU matmul.
#   flat(conv2d([avg;max], w, pad))  ==  concat([flat(avg), flat(max)], axis=-1) @ M
# --------------------------------------------------------------------------------------
def _conv_as_matrix(w_spa, H, W, pad):
    Cm, K, _ = w_spa.shape
    HW = H * W
    oi = jnp.arange(H).reshape(H, 1, 1, 1)
    oj = jnp.arange(W).reshape(1, W, 1, 1)
    di = jnp.arange(K).reshape(1, 1, K, 1)
    dj = jnp.arange(K).reshape(1, 1, 1, K)
    ii = oi + di - pad                                      # input row, broadcasts to (H,W,K,K)
    jj = oj + dj - pad                                      # input col
    valid = (ii >= 0) & (ii < H) & (jj >= 0) & (jj < W)
    q = jnp.clip(ii, 0, H - 1) * W + jnp.clip(jj, 0, W - 1)  # input flat index
    p = oi * W + oj                                          # output flat index
    q = jnp.broadcast_to(q, (H, W, K, K)).reshape(-1)
    p = jnp.broadcast_to(p, (H, W, K, K)).reshape(-1)
    valid = jnp.broadcast_to(valid, (H, W, K, K)).reshape(-1)
    mats = []
    for c in range(Cm):
        vals = jnp.broadcast_to(w_spa[c].reshape(1, 1, K, K), (H, W, K, K)).reshape(-1)
        vals = jnp.where(valid, vals, 0.0)
        mats.append(jnp.zeros((HW, HW), jnp.float32).at[q, p].add(vals))
    return jnp.concatenate(mats, axis=0)                     # (Cm*HW, HW)


# --------------------------------------------------------------------------------------
# Wrapper
# --------------------------------------------------------------------------------------
@jax.jit
def gap_forward(params, x_nchw):
    N, C, H, W = x_nchw.shape
    HW = H * W
    w_spa = params["w_spa"].astype(jnp.float32)              # (2, K, K)
    b_spa = params["b_spa"].reshape(1, 1).astype(jnp.float32)
    w1 = params["w1"].astype(jnp.float32)                    # (C_hid, C)
    w2 = params["w2"].astype(jnp.float32)                    # (C, C_hid)

    m = _conv_as_matrix(w_spa, H, W, pad=w_spa.shape[-1] // 2)   # (2*HW, HW)
    x_flat = x_nchw.reshape(N, C, HW).astype(jnp.float32)        # free metadata reshape

    out_flat = pl.pallas_call(
        _gap_kernel,
        out_shape=jax.ShapeDtypeStruct((N, C, HW), jnp.float32),
        grid=(N,),
        in_specs=[
            pl.BlockSpec((1, C, HW), lambda b: (b, 0, 0)),        # activations, lane-dense
            pl.BlockSpec((2 * HW, HW), lambda b: (0, 0)),         # folded 7x7 conv matrix
            pl.BlockSpec((1, 1), lambda b: (0, 0)),               # spatial-conv bias
            pl.BlockSpec(w1.shape, lambda b: (0, 0)),             # channel-MLP fc1
            pl.BlockSpec(w2.shape, lambda b: (0, 0)),             # channel-MLP fc2
        ],
        out_specs=pl.BlockSpec((1, C, HW), lambda b: (b, 0, 0)),
        compiler_params=pltpu.CompilerParams(
            dimension_semantics=("parallel",)),                   # v7x: one image per TC
    )(x_flat, m, b_spa, w1, w2)

    return out_flat.reshape(N, C, H, W)


# --------------------------------------------------------------------------------------
# Deterministic parameter init (CBAM-style assumed attentions)
# --------------------------------------------------------------------------------------
def init_gap_params(key, in_ch, out_ch, ratio=4, k_spa=7):
    # forward computes x + x*cha_gate, which requires out_ch == in_ch (true in the source nets)
    assert out_ch == in_ch
    hidden = max(in_ch // ratio, 1)
    k1, k2, k3, k4 = jax.random.split(key, 4)
    w_spa = jax.random.normal(k1, (2, k_spa, k_spa), jnp.float32) / (2 * k_spa * k_spa) ** 0.5
    b_spa = 0.1 * jax.random.normal(k2, (1,), jnp.float32)
    w1 = jax.random.normal(k3, (hidden, in_ch), jnp.float32) / in_ch ** 0.5
    w2 = jax.random.normal(k4, (out_ch, hidden), jnp.float32) / hidden ** 0.5
    return {"w_spa": w_spa, "b_spa": b_spa, "w1": w1, "w2": w2}


# --------------------------------------------------------------------------------------
# Pure-JAX reference (no Pallas) for a correctness sanity check
# --------------------------------------------------------------------------------------
def gap_reference(params, x):
    w_spa, b_spa, w1, w2 = (params["w_spa"], params["b_spa"], params["w1"], params["w2"])
    # channel attention
    p_avg = x.mean(axis=(2, 3))                              # (N, C)
    p_max = x.max(axis=(2, 3))
    mlp = lambda p: jnp.maximum(p @ w1.T, 0.0) @ w2.T
    cha = jax.nn.sigmoid(mlp(p_avg) + mlp(p_max))            # (N, C)
    x3 = x * cha[:, :, None, None]
    # spatial attention
    s = jnp.stack([x.mean(axis=1), x.max(axis=1)], axis=1)   # (N, 2, H, W)
    K = w_spa.shape[-1]
    pad = K // 2
    z = jax.lax.conv_general_dilated(
        s, w_spa.reshape(1, 2, K, K), window_strides=(1, 1),
        padding=((pad, pad), (pad, pad)))                    # (N, 1, H, W)
    spa = jax.nn.sigmoid(z + b_spa.reshape(1, 1, 1, 1))
    x2 = x * spa
    return jnp.maximum(x + x2 + x3, 0.0)


if __name__ == "__main__":
    key = jax.random.PRNGKey(0)
    k_param, k_x = jax.random.split(key)

    in_ch = out_ch = 16
    N, H, W = 2, 16, 16

    params = init_gap_params(k_param, in_ch, out_ch)
    x = jax.random.normal(k_x, (N, in_ch, H, W), jnp.float32)

    y = gap_forward(params, x)
    jax.block_until_ready(y)

    assert y.shape == (N, out_ch, H, W), y.shape
    assert bool(jnp.all(y >= 0.0))                           # final ReLU

    y_ref = gap_reference(params, x)
    err = float(jnp.max(jnp.abs(y - y_ref)))
    assert err < 3e-2, f"max abs diff vs reference: {err}"   # loose enough for any MXU f32 path

    print("KERNEL_OK")
</pallas_src>

<mosaic_0001>
module attributes {stable_mosaic.version = 11 : i64} {
  func.func private @main(%arg0: i32) attributes {dimension_semantics = [#tpu.dimension_semantics<core_parallel>], iteration_bounds = array<i64: 2>, tpu.core_type = #tpu.core_type<sc_scalar_subcore>, window_params = []} {
    return
  }
}

module attributes {stable_mosaic.version = 11 : i64} {
  func.func private @main(%arg0: i32) attributes {dimension_semantics = [#tpu.dimension_semantics<core_parallel>], iteration_bounds = array<i64: 2>, tpu.core_type = #tpu.core_type<sc_scalar_subcore>, window_params = []} {
    return
  }
}

module attributes {stable_mosaic.version = 11 : i64} {
  func.func @_gap_kernel(%arg0: i32, %arg1: memref<1x16x256xf32, #tpu.memory_space<vmem>>, %arg2: memref<512x256xf32, #tpu.memory_space<vmem>>, %arg3: memref<1x1xf32, #tpu.memory_space<vmem>>, %arg4: memref<4x16xf32, #tpu.memory_space<vmem>>, %arg5: memref<16x4xf32, #tpu.memory_space<vmem>>, %arg6: memref<1x16x256xf32, #tpu.memory_space<vmem>>) attributes {dimension_semantics = [#tpu.dimension_semantics<parallel>], iteration_bounds = array<i64: 2>, scalar_prefetch = 0 : i64, scratch_operands = 0 : i64, tpu.core_type = #tpu.core_type<tc>, window_params = [{transform_indices = @transform_0, window_bounds = array<i64: 1, 16, 256>}, {pipeline_mode = #tpu.pipeline_mode<synchronous>, transform_indices = @transform_1, window_bounds = array<i64: 512, 256>}, {pipeline_mode = #tpu.pipeline_mode<synchronous>, transform_indices = @transform_2, window_bounds = array<i64: 1, 1>}, {pipeline_mode = #tpu.pipeline_mode<synchronous>, transform_indices = @transform_3, window_bounds = array<i64: 4, 16>}, {pipeline_mode = #tpu.pipeline_mode<synchronous>, transform_indices = @transform_4, window_bounds = array<i64: 16, 4>}, {transform_indices = @transform_5, window_bounds = array<i64: 1, 16, 256>}]} {
    %c0 = arith.constant 0 : index
    %c0_0 = arith.constant 0 : index
    %c0_1 = arith.constant 0 : index
    %0 = vector.load %arg1[%c0, %c0_0, %c0_1] : memref<1x16x256xf32, #tpu.memory_space<vmem>>, vector<1x16x256xf32>
    %1 = vector.shape_cast %0 : vector<1x16x256xf32> to vector<16x256xf32>
    %cst = arith.constant dense<0.000000e+00> : vector<16xf32>
    %2 = vector.multi_reduction <add>, %1, %cst [1] : vector<16x256xf32> to vector<16xf32>
    %3 = vector.shape_cast %2 : vector<16xf32> to vector<16x1xf32>
    %cst_2 = arith.constant 2.560000e+02 : f32
    %4 = vector.broadcast %cst_2 : f32 to vector<16x1xf32>
    %5 = arith.divf %3, %4 : vector<16x1xf32>
    %cst_3 = arith.constant dense<0xFF800000> : vector<16xf32>
    %6 = vector.multi_reduction <maximumf>, %1, %cst_3 [1] : vector<16x256xf32> to vector<16xf32>
    %7 = vector.shape_cast %6 : vector<16xf32> to vector<16x1xf32>
    %c0_4 = arith.constant 0 : index
    %c0_5 = arith.constant 0 : index
    %8 = vector.load %arg4[%c0_4, %c0_5] : memref<4x16xf32, #tpu.memory_space<vmem>>, vector<4x16xf32>
    %cst_6 = arith.constant dense<0.000000e+00> : vector<4x1xf32>
    %9 = tpu.matmul %8, %5, %cst_6 {dimension_numbers = #tpu.dot_dimension_numbers<[1], [0], [0], [1], [0, 0, 1, 1], [], []>} : vector<4x16xf32>, vector<16x1xf32>, vector<4x1xf32> -> vector<4x1xf32>
    %cst_7 = arith.constant 0.000000e+00 : f32
    %10 = vector.broadcast %cst_7 : f32 to vector<4x1xf32>
    %11 = arith.maximumf %9, %10 : vector<4x1xf32>
    %c0_8 = arith.constant 0 : index
    %c0_9 = arith.constant 0 : index
    %12 = vector.load %arg5[%c0_8, %c0_9] : memref<16x4xf32, #tpu.memory_space<vmem>>, vector<16x4xf32>
    %cst_10 = arith.constant dense<0.000000e+00> : vector<16x1xf32>
    %13 = tpu.matmul %12, %11, %cst_10 {dimension_numbers = #tpu.dot_dimension_numbers<[1], [0], [0], [1], [0, 0, 1, 1], [], []>} : vector<16x4xf32>, vector<4x1xf32>, vector<16x1xf32> -> vector<16x1xf32>
    %c0_11 = arith.constant 0 : index
    %c0_12 = arith.constant 0 : index
    %14 = vector.load %arg4[%c0_11, %c0_12] : memref<4x16xf32, #tpu.memory_space<vmem>>, vector<4x16xf32>
    %cst_13 = arith.constant dense<0.000000e+00> : vector<4x1xf32>
    %15 = tpu.matmul %14, %7, %cst_13 {dimension_numbers = #tpu.dot_dimension_numbers<[1], [0], [0], [1], [0, 0, 1, 1], [], []>} : vector<4x16xf32>, vector<16x1xf32>, vector<4x1xf32> -> vector<4x1xf32>
    %cst_14 = arith.constant 0.000000e+00 : f32
    %16 = vector.broadcast %cst_14 : f32 to vector<4x1xf32>
    %17 = arith.maximumf %15, %16 : vector<4x1xf32>
    %c0_15 = arith.constant 0 : index
    %c0_16 = arith.constant 0 : index
    %18 = vector.load %arg5[%c0_15, %c0_16] : memref<16x4xf32, #tpu.memory_space<vmem>>, vector<16x4xf32>
    %cst_17 = arith.constant dense<0.000000e+00> : vector<16x1xf32>
    %19 = tpu.matmul %18, %17, %cst_17 {dimension_numbers = #tpu.dot_dimension_numbers<[1], [0], [0], [1], [0, 0, 1, 1], [], []>} : vector<16x4xf32>, vector<4x1xf32>, vector<16x1xf32> -> vector<16x1xf32>
    %20 = arith.addf %13, %19 : vector<16x1xf32>
    %cst_18 = arith.constant 0.000000e+00 : f32
    %21 = vector.broadcast %cst_18 : f32 to vector<16x1xf32>
    %22 = arith.subf %21, %20 : vector<16x1xf32>
    %23 = math.exp %22 : vector<16x1xf32>
    %cst_19 = arith.constant 1.000000e+00 : f32
    %24 = vector.broadcast %cst_19 : f32 to vector<16x1xf32>
    %25 = arith.addf %24, %23 : vector<16x1xf32>
    %cst_20 = arith.constant 1.000000e+00 : f32
    %26 = vector.broadcast %cst_20 : f32 to vector<16x1xf32>
    %27 = arith.divf %26, %25 : vector<16x1xf32>
    %cst_21 = arith.constant dense<0.000000e+00> : vector<256xf32>
    %28 = vector.multi_reduction <add>, %1, %cst_21 [0] : vector<16x256xf32> to vector<256xf32>
    %29 = vector.shape_cast %28 : vector<256xf32> to vector<1x256xf32>
    %cst_22 = arith.constant 1.600000e+01 : f32
    %30 = vector.broadcast %cst_22 : f32 to vector<1x256xf32>
    %31 = arith.divf %29, %30 : vector<1x256xf32>
    %cst_23 = arith.constant dense<0xFF800000> : vector<256xf32>
    %32 = vector.multi_reduction <maximumf>, %1, %cst_23 [0] : vector<16x256xf32> to vector<256xf32>
    %33 = vector.shape_cast %32 : vector<256xf32> to vector<1x256xf32>
    %34 = tpu.concatenate %31, %33 in 1 : vector<1x256xf32>, vector<1x256xf32> -> vector<1x512xf32>
    %c0_24 = arith.constant 0 : index
    %c0_25 = arith.constant 0 : index
    %35 = vector.load %arg2[%c0_24, %c0_25] : memref<512x256xf32, #tpu.memory_space<vmem>>, vector<512x256xf32>
    %cst_26 = arith.constant dense<0.000000e+00> : vector<1x256xf32>
    %36 = tpu.matmul %34, %35, %cst_26 {dimension_numbers = #tpu.dot_dimension_numbers<[1], [0], [0], [1], [0, 0, 1, 1], [], []>} : vector<1x512xf32>, vector<512x256xf32>, vector<1x256xf32> -> vector<1x256xf32>
    %c0_27 = arith.constant 0 : index
    %c0_28 = arith.constant 0 : index
    %37 = vector.load %arg3[%c0_27, %c0_28] : memref<1x1xf32, #tpu.memory_space<vmem>>, vector<1x1xf32>
    %38 = vector.broadcast %37 : vector<1x1xf32> to vector<1x256xf32>
    %39 = arith.addf %36, %38 : vector<1x256xf32>
    %cst_29 = arith.constant 0.000000e+00 : f32
    %40 = vector.broadcast %cst_29 : f32 to vector<1x256xf32>
    %41 = arith.subf %40, %39 : vector<1x256xf32>
    %42 = math.exp %41 : vector<1x256xf32>
    %cst_30 = arith.constant 1.000000e+00 : f32
    %43 = vector.broadcast %cst_30 : f32 to vector<1x256xf32>
    %44 = arith.addf %43, %42 : vector<1x256xf32>
    %cst_31 = arith.constant 1.000000e+00 : f32
    %45 = vector.broadcast %cst_31 : f32 to vector<1x256xf32>
    %46 = arith.divf %45, %44 : vector<1x256xf32>
    %cst_32 = arith.constant 1.000000e+00 : f32
    %47 = vector.broadcast %cst_32 : f32 to vector<1x256xf32>
    %48 = arith.addf %47, %46 : vector<1x256xf32>
    %49 = vector.broadcast %48 : vector<1x256xf32> to vector<16x256xf32>
    %50 = vector.broadcast %27 : vector<16x1xf32> to vector<16x256xf32>
    %51 = arith.addf %49, %50 : vector<16x256xf32>
    %52 = arith.mulf %1, %51 : vector<16x256xf32>
    %cst_33 = arith.constant 0.000000e+00 : f32
    %53 = vector.broadcast %cst_33 : f32 to vector<16x256xf32>
    %54 = arith.maximumf %52, %53 : vector<16x256xf32>
    %c0_34 = arith.constant 0 : index
    %c0_35 = arith.constant 0 : index
    %c0_36 = arith.constant 0 : index
    %55 = vector.load %arg6[%c0_34, %c0_35, %c0_36] : memref<1x16x256xf32, #tpu.memory_space<vmem>>, vector<1x16x256xf32>
    %56 = vector.shape_cast %55 : vector<1x16x256xf32> to vector<16x256xf32>
    %57 = vector.shape_cast %54 : vector<16x256xf32> to vector<1x16x256xf32>
    tpu.vector_store %arg6[%c0_34, %c0_35, %c0_36], %57 {strides = array<i32>} : memref<1x16x256xf32, #tpu.memory_space<vmem>>, vector<1x16x256xf32>,
    return
  }
  func.func @transform_0(%arg0: i32) -> (i32, i32, i32) {
    %c0_i32 = arith.constant 0 : i32
    %c0_i32_0 = arith.constant 0 : i32
    %c0_i32_1 = arith.constant 0 : i32
    return %arg0, %c0_i32, %c0_i32_0 : i32, i32, i32
  }
  func.func @transform_1(%arg0: i32) -> (i32, i32) {
    %c0_i32 = arith.constant 0 : i32
    %c0_i32_0 = arith.constant 0 : i32
    %c0_i32_1 = arith.constant 0 : i32
    return %c0_i32, %c0_i32_0 : i32, i32
  }
  func.func @transform_2(%arg0: i32) -> (i32, i32) {
    %c0_i32 = arith.constant 0 : i32
    %c0_i32_0 = arith.constant 0 : i32
    %c0_i32_1 = arith.constant 0 : i32
    return %c0_i32, %c0_i32_0 : i32, i32
  }
  func.func @transform_3(%arg0: i32) -> (i32, i32) {
    %c0_i32 = arith.constant 0 : i32
    %c0_i32_0 = arith.constant 0 : i32
    %c0_i32_1 = arith.constant 0 : i32
    return %c0_i32, %c0_i32_0 : i32, i32
  }
  func.func @transform_4(%arg0: i32) -> (i32, i32) {
    %c0_i32 = arith.constant 0 : i32
    %c0_i32_0 = arith.constant 0 : i32
    %c0_i32_1 = arith.constant 0 : i32
    return %c0_i32, %c0_i32_0 : i32, i32
  }
  func.func @transform_5(%arg0: i32) -> (i32, i32, i32) {
    %c0_i32 = arith.constant 0 : i32
    %c0_i32_0 = arith.constant 0 : i32
    %c0_i32_1 = arith.constant 0 : i32
    return %arg0, %c0_i32, %c0_i32_0 : i32, i32, i32
  }
}

</mosaic_0001>

<bundles_post_ra>
// kernel: gap_forward.1
= control target key start
LH: loop header
LB: loop body
LE: loop exit
PB: predicated region body
PF: predicated region fallthrough
CT: control target
= control target key end

     0   :  { %s1115_s20 = smov 0   ;;  %s1564_s0 = inlined_call_operand.vmem [shape: f32[2,16,256], index: 0, kind: input, shape index: {}]   ;;  %s1565_s1 = inlined_call_operand.vmem [shape: f32[512,256], index: 1, kind: input, shape index: {}]   ;;  %s1566_s2 = inlined_call_operand.<no memory space> [shape: f32[1,1], index: 2, kind: input, shape index: {}]   ;;  %s1567_s3 = inlined_call_operand.vmem [shape: f32[4,16], index: 3, kind: input, shape index: {}]   ;;  %s1568_s4 = inlined_call_operand.vmem [shape: f32[16,4], index: 4, kind: input, shape index: {}]   ;;  %s1569_s5 = inlined_call_operand.vmem [shape: f32[2,16,256], index: 5, kind: output, shape index: {}]  }
   0x1   :  { %v10_v0 = vstv %s1566_s2 }
   0x2   :  { %11 = vst [vmem:[#allocation2] sm:$0x1] %v10_v0 }
   0x3 LB: > { %s985_s21 = sadd.s32 4294967295, %s1077_s20   ;;  %p989_p0 = scmp.ge.s32.totalorder %s1077_s20, 1  ;;  %s1077_s20 = sphi %s1115_s20, %s17_s20  }
   0x4   : > { %p189_p1 = scmp.lt.s32.totalorder %s1077_s20, 3 }
   0x6   : > { %p190_p2 = pnand %p989_p0, %p189_p1 }
   0x7   : > { %p217_p3 = scmp.lt.s32.totalorder (!%p190_p2), %s985_s21, 1 }
   0x8   : > { %193 = sbr.rel (%p190_p2) target bundleno = 727 (0x2d7), region = 40 }
   0xd   : > { %s1571_s21 = smov (!%p217_p3, %s985_s21), 1  ;;  %v1079_v9 = vmov 0.0   ;;  %vm1080_vm0 = vmmov 0   ;;  %v246_v14 = vld [vmem:[%s1567_s3] sm:$0xf]  ;;  %vm247_vm1 = vcmask 130048  }
   0xe   : > { %s1004_s2 = sshll.u32 %s1571_s21, 5  ;;  %1018 = vmatprep.subr.mxu0 %v1079_v9  ;;  %1025 = vmatprep.subr.mxu1 %v1079_v9  ;;  %v322_v17 = vld [vmem:[%s1568_s4] sm:$0xff]  ;;  %vm395_vm2 = vcmask 31744   ;;  %v1081_v19 = vmov 0   ;;  %vm402_vm3 = vcmask 1043456   ;;  %v323_v24 = vld [vmem:[%s1568_s4 + $0x8] sm:$0xff] }
   0xf   : > { %s221_s24 = scalar_lea.vmem %s1564_s0, %s1004_s2  ;;  %1022 = vmatprep.mubr.msk.f32.mxu0 %vm1080_vm0, %v1079_v9  ;;  %1029 = vmatprep.mubr.msk.f32.mxu1 %vm1080_vm0, %v1079_v9  ;;  %v730_v18 = vld [vmem:[#allocation2] sm:$0x1]  ;;  %v697_v26 = vld [vmem:[%s1565_s1 + $0x2f8] sm:$0xff]  ;;  %v632_v29 = vld [vmem:[%s1565_s1 + $0xf0] sm:$0xff]  ;;  %s226_s11 = scalar_lea.vmem %s1569_s5, %s1004_s2 }
  0x10   : > { %v1131_v1 = vld [vmem:[%s221_s24 + $0x10] sm:$0xff]  ;;  %v1133_v2 = vld [vmem:[%s221_s24 + $0x18] sm:$0xff]  ;;  %v1135_v3 = vld [vmem:[%s221_s24] sm:$0xff]  ;;  %1053 = vset.pattern.permute.xlu0 %v1081_v19  ;;  %1054 = vset.pattern.permute.xlu1 %v1081_v19 }
  0x11   : > { %v234_v4 = vadd.f32 %v1133_v2, %v1131_v1  ;;  %v1139_v5 = vld [vmem:[%s221_s24 + $0x8] sm:$0xff]  ;;  %v243_v7 = vmax.f32 %v1131_v1, %v1133_v2  ;;  %v633_v28 = vld [vmem:[%s1565_s1 + $0xf8] sm:$0xff]  ;;  %v696_v30 = vld [vmem:[%s1565_s1 + $0x2f0] sm:$0xff] }
  0x12   : > { %v231_v6 = vadd.f32 %v1139_v5, %v1135_v3  ;;  %v240_v8 = vmax.f32 %v1135_v3, %v1139_v5  ;;  %v631_v31 = vld [vmem:[%s1565_s1 + $0xe8] sm:$0xff]  ;;  %v630_v33 = vld [vmem:[%s1565_s1 + $0xe0] sm:$0xff]  ;;  %v629_v35 = vld [vmem:[%s1565_s1 + $0xd8] sm:$0xff] }
  0x13   : > { %235 = vadd.xlane.f32.xlu0 %v234_v4  ;;  %v695_v32 = vld [vmem:[%s1565_s1 + $0x2e8] sm:$0xff]  ;;  %v694_v34 = vld [vmem:[%s1565_s1 + $0x2e0] sm:$0xff]  ;;  %v693_v36 = vld [vmem:[%s1565_s1 + $0x2d8] sm:$0xff] }
  0x14   : > { %232 = vadd.xlane.f32.xlu1 %v231_v6  ;;  %v628_v37 = vld [vmem:[%s1565_s1 + $0xd0] sm:$0xff]  ;;  %v627_v39 = vld [vmem:[%s1565_s1 + $0xc8] sm:$0xff]  ;;  %v626_v41 = vld [vmem:[%s1565_s1 + $0xc0] sm:$0xff] }
  0x15   : > { %v692_v38 = vld [vmem:[%s1565_s1 + $0x2d0] sm:$0xff]  ;;  %v691_v40 = vld [vmem:[%s1565_s1 + $0x2c8] sm:$0xff]  ;;  %v690_v42 = vld [vmem:[%s1565_s1 + $0x2c0] sm:$0xff] }
  0x16   : > { %v625_v43 = vld [vmem:[%s1565_s1 + $0xb8] sm:$0xff]  ;;  %v624_v45 = vld [vmem:[%s1565_s1 + $0xb0] sm:$0xff]  ;;  %v623_v47 = vld [vmem:[%s1565_s1 + $0xa8] sm:$0xff] }
  0x17   : > { %244 = vmax.xlane.f32.xlu0 %v243_v7  ;;  %v689_v44 = vld [vmem:[%s1565_s1 + $0x2b8] sm:$0xff]  ;;  %v688_v46 = vld [vmem:[%s1565_s1 + $0x2b0] sm:$0xff]  ;;  %v687_v48 = vld [vmem:[%s1565_s1 + $0x2a8] sm:$0xff] }
  0x18   : > { %241 = vmax.xlane.f32.xlu1 %v240_v8  ;;  %v622_v49 = vld [vmem:[%s1565_s1 + $0xa0] sm:$0xff]  ;;  %v621_v51 = vld [vmem:[%s1565_s1 + $0x98] sm:$0xff]  ;;  %v620_v53 = vld [vmem:[%s1565_s1 + $0x90] sm:$0xff] }
  0x19   : > { %v686_v50 = vld [vmem:[%s1565_s1 + $0x2a0] sm:$0xff]  ;;  %v685_v52 = vld [vmem:[%s1565_s1 + $0x298] sm:$0xff]  ;;  %v684_v54 = vld [vmem:[%s1565_s1 + $0x290] sm:$0xff] }
  0x1a   : > { %v619_v55 = vld [vmem:[%s1565_s1 + $0x88] sm:$0xff]  ;;  %v618_v57 = vld [vmem:[%s1565_s1 + $0x80] sm:$0xff]  ;;  %v617_v59 = vld [vmem:[%s1565_s1 + $0x78] sm:$0xff] }
  0x1b   : > { %v683_v56 = vld [vmem:[%s1565_s1 + $0x288] sm:$0xff]  ;;  %v682_v58 = vld [vmem:[%s1565_s1 + $0x280] sm:$0xff]  ;;  %v681_v60 = vld [vmem:[%s1565_s1 + $0x278] sm:$0xff] }
  0x1c   : > { %v616_v61 = vld [vmem:[%s1565_s1 + $0x70] sm:$0xff]  ;;  %v615_v63 = vld [vmem:[%s1565_s1 + $0x68] sm:$0xff]  ;;  %v614_v4 = vld [vmem:[%s1565_s1 + $0x60] sm:$0xff] }
  0x1d   : > { %v680_v62 = vld [vmem:[%s1565_s1 + $0x270] sm:$0xff]  ;;  %v679_v0 = vld [vmem:[%s1565_s1 + $0x268] sm:$0xff]  ;;  %v678_v6 = vld [vmem:[%s1565_s1 + $0x260] sm:$0xff] }
  0x1e   : > { %v613_v7 = vld [vmem:[%s1565_s1 + $0x58] sm:$0xff]  ;;  %v607_v19 = vld [vmem:[%s1565_s1 + $0x28] sm:$0xff] }
  0x1f   : > { %v677_v8 = vld [vmem:[%s1565_s1 + $0x258] sm:$0xff] }
  0x2d   : > { %733 = vperm.xlu0 %1053, %v730_v18   ;;  %v672_v18 = vld [vmem:[%s1565_s1 + $0x230] sm:$0xff] }
  0x9c   : > { %v236_v10 = vpop.xlane.xlu0 %235 }
  0x9d   : > { %v239_v11 = vmul.f32 0.00390625, %v236_v10  ;;  %v233_v12 = vpop.xlane.xlu1 %232  ;;  %v676_v10 = vld [vmem:[%s1565_s1 + $0x250] sm:$0xff] }
  0x9e   : > { %v238_v13 = vmul.f32 0.00390625, %v233_v12  ;;  %v675_v12 = vld [vmem:[%s1565_s1 + $0x248] sm:$0xff] }
  0x9f   : > { %1019 = vmatpush3.msra.mxu0 %v239_v11  ;;  %v611_v11 = vld [vmem:[%s1565_s1 + $0x48] sm:$0xff] }
  0xa0   : > { %1020 = vmatprep.subr.mxu0 %v1079_v9  ;;  %v245_v15 = vpop.xlane.xlu0 %244 }
  0xa1   : > { %1021 = vmatpush3.msra.mxu0 %v238_v13  ;;  %1026 = vmatpush3.msra.mxu1 %v245_v15  ;;  %v242_v16 = vpop.xlane.xlu1 %241  ;;  %v610_v13 = vld [vmem:[%s1565_s1 + $0x40] sm:$0xff]  ;;  %v609_v15 = vld [vmem:[%s1565_s1 + $0x38] sm:$0xff] }
  0xa2   : > { %1023 = vmatmul.mubr.msk.f32.vlgmr.msra.gmra.mxu0 %vm247_vm1, %v246_v14  ;;  %1027 = vmatprep.subr.mxu1 %v1079_v9  ;;  %v612_v9 = vld [vmem:[%s1565_s1 + $0x50] sm:$0xff] }
  0xa3   : > { %1028 = vmatpush3.msra.mxu1 %v242_v16  ;;  %1034 = vmatprep.mubr.msk.f32.mxu0 %vm395_vm2, %v322_v17  ;;  %v673_v16 = vld [vmem:[%s1565_s1 + $0x238] sm:$0xff] }
  0xa4   : > { %1030 = vmatmul.mubr.msk.f32.vlgmr.msra.gmra.mxu1 %vm247_vm1, %v246_v14  ;;  %v674_v14 = vld [vmem:[%s1565_s1 + $0x240] sm:$0xff] }
  0xa5   : > { %1039 = vmatprep.mubr.msk.f32.mxu1 %vm395_vm2, %v322_v17  ;;  %v608_v17 = vld [vmem:[%s1565_s1 + $0x30] sm:$0xff] }
 0x162   : > { %v317_v20 = vpop.f32.mrf.mxu0 }
 0x163   : > { %v321_v21 = vmax.f32 %v317_v20, 0.0  ;;  %v671_v20 = vld [vmem:[%s1565_s1 + $0x228] sm:$0xff] }
 0x164   : > { %v1024_v22 = vpop.f32.mrf.mxu0  ;;  %v390_v23 = vpop.f32.mrf.mxu1 }
 0x165   : > { %v394_v25 = vmax.f32 %v390_v23, 0.0  ;;  %1037 = vmatprep.subr.msk.mxu1 %vm402_vm3, %v321_v21  ;;  %v670_v22 = vld [vmem:[%s1565_s1 + $0x220] sm:$0xff]  ;;  %v605_v23 = vld [vmem:[%s1565_s1 + $0x18] sm:$0xff] }
 0x166   : > { %v1031_v27 = vpop.f32.mrf.mxu1  ;;  %1038 = vmatpush3.msk.msra.mxu1 %vm402_vm3, %v321_v21  ;;  %v606_v21 = vld [vmem:[%s1565_s1 + $0x20] sm:$0xff] }
 0x167   : > { %1032 = vmatprep.subr.msk.mxu0 %vm402_vm3, %v394_v25  ;;  %1040 = vmatmul.mubr.msk.f32.vlgmr.msra.gmra.mxu1 %vm395_vm2, %v323_v24  ;;  %v603_v27 = vld [vmem:[%s1565_s1 + $0x8] sm:$0xff] }
 0x168   : > { %1033 = vmatpush3.msk.msra.mxu0 %vm402_vm3, %v394_v25  ;;  %811 = vmatprep.subr.mxu1 %v697_v26  ;;  %v604_v25 = vld [vmem:[%s1565_s1 + $0x10] sm:$0xff] }
 0x169   : > { %1035 = vmatmul.mubr.msk.f32.vlgmr.msra.gmra.mxu0 %vm395_vm2, %v323_v24  ;;  %740 = vmatprep.subr.mxu0 %v633_v28  ;;  %v669_v24 = vld [vmem:[%s1565_s1 + $0x218] sm:$0xff]  ;;  %v668_v26 = vld [vmem:[%s1565_s1 + $0x210] sm:$0xff]  ;;  %v667_v28 = vld [vmem:[%s1565_s1 + $0x208] sm:$0xff] }
 0x16a   : > { %741 = vmatpush1.msra.mxu0 %v632_v29  ;;  %812 = vmatpush1.msra.mxu1 %v696_v30  ;;  %v602_v29 = vld [vmem:[%s1565_s1] sm:$0xff] }
 0x16b   : > { %742 = vmatprep.subr.mxu0 %v631_v31  ;;  %813 = vmatprep.subr.mxu1 %v695_v32  ;;  %v666_v30 = vld [vmem:[%s1565_s1 + $0x200] sm:$0xff]  ;;  %v665_v31 = vld [vmem:[%s1565_s1 + $0x1f8] sm:$0xff] }
 0x16c   : > { %743 = vmatpush1.msra.mxu0 %v630_v33  ;;  %814 = vmatpush1.msra.mxu1 %v694_v34  ;;  %v729_v32 = vld [vmem:[%s1565_s1 + $0x3f8] sm:$0xff]  ;;  %v578_v33 = vadd.f32 %v1133_v2, %v1139_v5  ;;  %v664_v34 = vld [vmem:[%s1565_s1 + $0x1f0] sm:$0xff] }
 0x16d   : > { %744 = vmatprep.subr.mxu0 %v629_v35  ;;  %815 = vmatprep.subr.mxu1 %v693_v36  ;;  %v728_v35 = vld [vmem:[%s1565_s1 + $0x3f0] sm:$0xff]  ;;  %v663_v36 = vld [vmem:[%s1565_s1 + $0x1e8] sm:$0xff] }
 0x16e   : > { %745 = vmatpush1.msra.mxu0 %v628_v37  ;;  %816 = vmatpush1.msra.mxu1 %v692_v38  ;;  %v727_v37 = vld [vmem:[%s1565_s1 + $0x3e8] sm:$0xff]  ;;  %v571_v38 = vadd.f32 %v1131_v1, %v1135_v3 }
 0x16f   : > { %746 = vmatprep.subr.mxu0 %v627_v39  ;;  %817 = vmatprep.subr.mxu1 %v691_v40  ;;  %v662_v39 = vld [vmem:[%s1565_s1 + $0x1e0] sm:$0xff] }
 0x170   : > { %747 = vmatpush1.msra.mxu0 %v626_v41  ;;  %818 = vmatpush1.msra.mxu1 %v690_v42  ;;  %v726_v40 = vld [vmem:[%s1565_s1 + $0x3e0] sm:$0xff]  ;;  %v661_v41 = vld [vmem:[%s1565_s1 + $0x1d8] sm:$0xff] }
 0x171   : > { %748 = vmatprep.subr.mxu0 %v625_v43  ;;  %819 = vmatprep.subr.mxu1 %v689_v44  ;;  %v725_v42 = vld [vmem:[%s1565_s1 + $0x3d8] sm:$0xff]  ;;  %v579_v43 = vrot.slane %v578_v33, 4  ;;  %v660_v44 = vld [vmem:[%s1565_s1 + $0x1d0] sm:$0xff] }
 0x172   : > { %749 = vmatpush1.msra.mxu0 %v624_v45  ;;  %820 = vmatpush1.msra.mxu1 %v688_v46  ;;  %v724_v45 = vld [vmem:[%s1565_s1 + $0x3d0] sm:$0xff]  ;;  %v659_v46 = vld [vmem:[%s1565_s1 + $0x1c8] sm:$0xff] }
 0x173   : > { %750 = vmatprep.subr.mxu0 %v623_v47  ;;  %821 = vmatprep.subr.mxu1 %v687_v48  ;;  %v723_v47 = vld [vmem:[%s1565_s1 + $0x3c8] sm:$0xff]  ;;  %v658_v48 = vld [vmem:[%s1565_s1 + $0x1c0] sm:$0xff] }
 0x174   : > { %751 = vmatpush1.msra.mxu0 %v622_v49  ;;  %822 = vmatpush1.msra.mxu1 %v686_v50  ;;  %v722_v49 = vld [vmem:[%s1565_s1 + $0x3c0] sm:$0xff]  ;;  %v572_v50 = vrot.slane %v571_v38, 4 }
 0x175   : > { %752 = vmatprep.subr.mxu0 %v621_v51  ;;  %823 = vmatprep.subr.mxu1 %v685_v52  ;;  %v657_v51 = vld [vmem:[%s1565_s1 + $0x1b8] sm:$0xff] }
 0x176   : > { %753 = vmatpush1.msra.mxu0 %v620_v53  ;;  %824 = vmatpush1.msra.mxu1 %v684_v54  ;;  %v721_v52 = vld [vmem:[%s1565_s1 + $0x3b8] sm:$0xff]  ;;  %v580_v53 = vadd.f32 %v579_v43, %v578_v33  ;;  %v595_v54 = vmax.f32 %v1139_v5, %v1133_v2  ;;  %v640_v43 = vld [vmem:[%s1565_s1 + $0x130] sm:$0xff] }
 0x177   : > { %754 = vmatprep.subr.mxu0 %v619_v55  ;;  %825 = vmatprep.subr.mxu1 %v683_v56  ;;  %v588_v55 = vmax.f32 %v1135_v3, %v1131_v1  ;;  %v656_v56 = vld [vmem:[%s1565_s1 + $0x1b0] sm:$0xff] }
 0x178   : > { %755 = vmatpush1.msra.mxu0 %v618_v57  ;;  %826 = vmatpush1.msra.mxu1 %v682_v58  ;;  %v720_v57 = vld [vmem:[%s1565_s1 + $0x3b0] sm:$0xff]  ;;  %v655_v58 = vld [vmem:[%s1565_s1 + $0x1a8] sm:$0xff] }
 0x179   : > { %756 = vmatprep.subr.mxu0 %v617_v59  ;;  %827 = vmatprep.subr.mxu1 %v681_v60  ;;  %v719_v59 = vld [vmem:[%s1565_s1 + $0x3a8] sm:$0xff]  ;;  %v654_v60 = vld [vmem:[%s1565_s1 + $0x1a0] sm:$0xff] }
 0x17a   : > { %757 = vmatpush1.msra.mxu0 %v616_v61  ;;  %828 = vmatpush1.msra.mxu1 %v680_v62  ;;  %v718_v61 = vld [vmem:[%s1565_s1 + $0x3a0] sm:$0xff]  ;;  %v573_v62 = vadd.f32 %v572_v50, %v571_v38 }
 0x17b   : > { %758 = vmatprep.subr.mxu0 %v615_v63  ;;  %829 = vmatprep.subr.mxu1 %v679_v0  ;;  %v653_v63 = vld [vmem:[%s1565_s1 + $0x198] sm:$0xff] }
 0x17c   : > { %759 = vmatpush1.msra.mxu0 %v614_v4  ;;  %830 = vmatpush1.msra.mxu1 %v678_v6  ;;  %v717_v0 = vld [vmem:[%s1565_s1 + $0x398] sm:$0xff]  ;;  %v581_v4 = vrot.slane %v580_v53, 2  ;;  %v596_v6 = vrot.slane %v595_v54, 4 }
 0x17d   : > { %760 = vmatprep.subr.mxu0 %v613_v7  ;;  %831 = vmatprep.subr.mxu1 %v677_v8  ;;  %v652_v7 = vld [vmem:[%s1565_s1 + $0x190] sm:$0xff] }
 0x17e   : > { %761 = vmatpush1.msra.mxu0 %v612_v9  ;;  %832 = vmatpush1.msra.mxu1 %v676_v10  ;;  %v716_v8 = vld [vmem:[%s1565_s1 + $0x390] sm:$0xff]  ;;  %v589_v9 = vrot.slane %v588_v55, 4  ;;  %v651_v10 = vld [vmem:[%s1565_s1 + $0x188] sm:$0xff] }
 0x17f   : > { %762 = vmatprep.subr.mxu0 %v611_v11  ;;  %833 = vmatprep.subr.mxu1 %v675_v12  ;;  %v715_v11 = vld [vmem:[%s1565_s1 + $0x388] sm:$0xff]  ;;  %v650_v12 = vld [vmem:[%s1565_s1 + $0x180] sm:$0xff] }
 0x180   : > { %763 = vmatpush1.msra.mxu0 %v610_v13  ;;  %834 = vmatpush1.msra.mxu1 %v674_v14  ;;  %v714_v13 = vld [vmem:[%s1565_s1 + $0x380] sm:$0xff]  ;;  %v574_v14 = vrot.slane %v573_v62, 2 }
 0x181   : > { %764 = vmatprep.subr.mxu0 %v609_v15  ;;  %835 = vmatprep.subr.mxu1 %v673_v16  ;;  %v649_v15 = vld [vmem:[%s1565_s1 + $0x178] sm:$0xff] }
 0x182   : > { %765 = vmatpush1.msra.mxu0 %v608_v17  ;;  %836 = vmatpush1.msra.mxu1 %v672_v18  ;;  %v713_v16 = vld [vmem:[%s1565_s1 + $0x378] sm:$0xff]  ;;  %v582_v17 = vadd.f32 %v581_v4, %v580_v53  ;;  %v597_v18 = vmax.f32 %v595_v54, %v596_v6 }
 0x183   : > { %766 = vmatprep.subr.mxu0 %v607_v19  ;;  %837 = vmatprep.subr.mxu1 %v671_v20  ;;  %v648_v19 = vld [vmem:[%s1565_s1 + $0x170] sm:$0xff] }
 0x184   : > { %767 = vmatpush1.msra.mxu0 %v606_v21  ;;  %838 = vmatpush1.msra.mxu1 %v670_v22  ;;  %v712_v20 = vld [vmem:[%s1565_s1 + $0x370] sm:$0xff]  ;;  %v590_v21 = vmax.f32 %v588_v55, %v589_v9  ;;  %v647_v22 = vld [vmem:[%s1565_s1 + $0x168] sm:$0xff] }
 0x185   : > { %768 = vmatprep.subr.mxu0 %v605_v23  ;;  %839 = vmatprep.subr.mxu1 %v669_v24  ;;  %v711_v23 = vld [vmem:[%s1565_s1 + $0x368] sm:$0xff]  ;;  %v646_v24 = vld [vmem:[%s1565_s1 + $0x160] sm:$0xff]  ;;  %v636_v55 = vld [vmem:[%s1565_s1 + $0x110] sm:$0xff] }
 0x186   : > { %769 = vmatpush1.msra.mxu0 %v604_v25  ;;  %840 = vmatpush1.msra.mxu1 %v668_v26  ;;  %v710_v25 = vld [vmem:[%s1565_s1 + $0x360] sm:$0xff]  ;;  %v575_v26 = vadd.f32 %v574_v14, %v573_v62  ;;  %v591_v33 = vrot.slane %v590_v21, 2 }
 0x187   : > { %770 = vmatprep.subr.mxu0 %v603_v27  ;;  %841 = vmatprep.subr.mxu1 %v667_v28  ;;  %v645_v27 = vld [vmem:[%s1565_s1 + $0x158] sm:$0xff]  ;;  %v698_v62 = vld [vmem:[%s1565_s1 + $0x300] sm:$0xff] }
 0x188   : > { %771 = vmatpush1.msra.mxu0 %v602_v29  ;;  %842 = vmatpush1.msra.mxu1 %v666_v30  ;;  %v709_v28 = vld [vmem:[%s1565_s1 + $0x358] sm:$0xff]  ;;  %v583_v29 = vrot.slane %v582_v17, 1  ;;  %v598_v30 = vrot.slane %v597_v18, 2  ;;  %v576_v38 = vrot.slane %v575_v26, 1 }
 0x189   : > { %772 = vmatprep.subr.mxu0 %v665_v31  ;;  %843 = vmatprep.subr.mxu1 %v729_v32  ;;  %v644_v31 = vld [vmem:[%s1565_s1 + $0x150] sm:$0xff] }
 0x18a   : > { %773 = vmatpush2.msra.mxu0 %v664_v34  ;;  %844 = vmatpush2.msra.mxu1 %v728_v35  ;;  %v708_v32 = vld [vmem:[%s1565_s1 + $0x350] sm:$0xff]  ;;  %v643_v34 = vld [vmem:[%s1565_s1 + $0x148] sm:$0xff]  ;;  %v577_v50 = vadd.f32 %v576_v38, %v575_v26 }
 0x18b   : > { %774 = vmatprep.subr.mxu0 %v663_v36  ;;  %845 = vmatprep.subr.mxu1 %v727_v37  ;;  %v707_v35 = vld [vmem:[%s1565_s1 + $0x348] sm:$0xff]  ;;  %v642_v36 = vld [vmem:[%s1565_s1 + $0x140] sm:$0xff] }
 0x18c   : > { %775 = vmatpush2.msra.mxu0 %v662_v39  ;;  %846 = vmatpush2.msra.mxu1 %v726_v40  ;;  %v706_v37 = vld [vmem:[%s1565_s1 + $0x340] sm:$0xff]  ;;  %v641_v39 = vld [vmem:[%s1565_s1 + $0x138] sm:$0xff] }
 0x18d   : > { %776 = vmatprep.subr.mxu0 %v661_v41  ;;  %847 = vmatprep.subr.mxu1 %v725_v42  ;;  %v705_v40 = vld [vmem:[%s1565_s1 + $0x338] sm:$0xff]  ;;  %v584_v41 = vadd.f32 %v583_v29, %v582_v17  ;;  %v599_v42 = vmax.f32 %v597_v18, %v598_v30 }
 0x18e   : > { %777 = vmatpush2.msra.mxu0 %v660_v44  ;;  %848 = vmatpush2.msra.mxu1 %v724_v45  ;;  %v704_v44 = vld [vmem:[%s1565_s1 + $0x330] sm:$0xff]  ;;  %v592_v45 = vmax.f32 %v590_v21, %v591_v33  ;;  %v736_v21 = vlaneseq }
 0x18f   : > { %778 = vmatprep.subr.mxu0 %v659_v46  ;;  %849 = vmatprep.subr.mxu1 %v723_v47  ;;  %v639_v46 = vld [vmem:[%s1565_s1 + $0x128] sm:$0xff]  ;;  %v587_v53 = vmul.f32 0.0625, %v584_v41  ;;  %v600_v54 = vrot.slane %v599_v42, 1 }
 0x190   : > { %779 = vmatpush2.msra.mxu0 %v658_v48  ;;  %850 = vmatpush2.msra.mxu1 %v722_v49  ;;  %v703_v47 = vld [vmem:[%s1565_s1 + $0x328] sm:$0xff]  ;;  %v638_v48 = vld [vmem:[%s1565_s1 + $0x120] sm:$0xff] }
 0x191   : > { %780 = vmatprep.subr.mxu0 %v657_v51  ;;  %851 = vmatprep.subr.mxu1 %v721_v52  ;;  %v702_v49 = vld [vmem:[%s1565_s1 + $0x320] sm:$0xff]  ;;  %v637_v51 = vld [vmem:[%s1565_s1 + $0x118] sm:$0xff] }
 0x192   : > { %781 = vmatpush2.msra.mxu0 %v656_v56  ;;  %852 = vmatpush2.msra.mxu1 %v720_v57  ;;  %v701_v52 = vld [vmem:[%s1565_s1 + $0x318] sm:$0xff]  ;;  %v593_v56 = vrot.slane %v592_v45, 1  ;;  %v635_v57 = vld [vmem:[%s1565_s1 + $0x108] sm:$0xff] }
 0x193   : > { %782 = vmatprep.subr.mxu0 %v655_v58  ;;  %853 = vmatprep.subr.mxu1 %v719_v59  ;;  %v700_v58 = vld [vmem:[%s1565_s1 + $0x310] sm:$0xff]  ;;  %v634_v59 = vld [vmem:[%s1565_s1 + $0x100] sm:$0xff] }
 0x194   : > { %783 = vmatpush2.msra.mxu0 %v654_v60  ;;  %854 = vmatpush2.msra.mxu1 %v718_v61  ;;  %v586_v60 = vmul.f32 0.0625, %v577_v50  ;;  %v699_v61 = vld [vmem:[%s1565_s1 + $0x308] sm:$0xff] }
 0x195   : > { %784 = vmatprep.subr.mxu0 %v653_v63  ;;  %855 = vmatprep.subr.mxu1 %v717_v0  ;;  %v601_v63 = vmax.f32 %v599_v42, %v600_v54  ;;  %v594_v0 = vmax.f32 %v592_v45, %v593_v56 }
 0x196   : > { %785 = vmatpush2.msra.mxu0 %v652_v7  ;;  %856 = vmatpush2.msra.mxu1 %v716_v8 }
 0x197   : > { %786 = vmatprep.subr.mxu0 %v651_v10  ;;  %857 = vmatprep.subr.mxu1 %v715_v11 }
 0x198   : > { %787 = vmatpush2.msra.mxu0 %v650_v12  ;;  %858 = vmatpush2.msra.mxu1 %v714_v13 }
 0x199   : > { %788 = vmatprep.subr.mxu0 %v649_v15  ;;  %859 = vmatprep.subr.mxu1 %v713_v16 }
 0x19a   : > { %789 = vmatpush2.msra.mxu0 %v648_v19  ;;  %860 = vmatpush2.msra.mxu1 %v712_v20 }
 0x19b   : > { %790 = vmatprep.subr.mxu0 %v647_v22  ;;  %861 = vmatprep.subr.mxu1 %v711_v23  ;;  %v737_v22 = vshrl.u32 %v736_v21, 7 }
 0x19c   : > { %791 = vmatpush2.msra.mxu0 %v646_v24  ;;  %862 = vmatpush2.msra.mxu1 %v710_v25  ;;  %v734_v24 = vpop.permute.xlu0 %733 }
 0x19d   : > { %792 = vmatprep.subr.mxu0 %v645_v27  ;;  %863 = vmatprep.subr.mxu1 %v709_v28  ;;  %v738_v23 = vsub.s32 0, %v737_v22 }
 0x19e   : > { %793 = vmatpush2.msra.mxu0 %v644_v31  ;;  %864 = vmatpush2.msra.mxu1 %v708_v32 }
 0x19f   : > { %794 = vmatprep.subr.mxu0 %v643_v34  ;;  %865 = vmatprep.subr.mxu1 %v707_v35  ;;  %v739_v26 = vrot.slane %v734_v24, %v738_v23 }
 0x1a0   : > { %795 = vmatpush2.msra.mxu0 %v642_v36  ;;  %866 = vmatpush2.msra.mxu1 %v706_v37 }
 0x1a1   : > { %796 = vmatprep.subr.mxu0 %v641_v39  ;;  %867 = vmatprep.subr.mxu1 %v705_v40 }
 0x1a2   : > { %797 = vmatpush2.msra.mxu0 %v640_v43  ;;  %868 = vmatpush2.msra.mxu1 %v704_v44 }
 0x1a3   : > { %798 = vmatprep.subr.mxu0 %v639_v46  ;;  %869 = vmatprep.subr.mxu1 %v703_v47 }
 0x1a4   : > { %799 = vmatpush2.msra.mxu0 %v638_v48  ;;  %870 = vmatpush2.msra.mxu1 %v702_v49 }
 0x1a5   : > { %800 = vmatprep.subr.mxu0 %v637_v51  ;;  %871 = vmatprep.subr.mxu1 %v701_v52 }
 0x1a6   : > { %801 = vmatpush2.msra.mxu0 %v636_v55  ;;  %804 = vmatprep.mubr.f32.mxu0 %v587_v53 }
 0x1a7   : > { %802 = vmatprep.subr.mxu0 %v635_v57  ;;  %872 = vmatpush2.msra.mxu1 %v700_v58 }
 0x1a8   : > { %803 = vmatpush2.msra.mxu0 %v634_v59  ;;  %873 = vmatprep.subr.mxu1 %v699_v61 }
 0x1a9   : > { %805 = vmatmul.mubr.f32.vlgmr.msra.gmra.mxu0 %v586_v60  ;;  %874 = vmatpush2.msra.mxu1 %v698_v62 }
 0x1aa   : > { %875 = vmatprep.mubr.f32.mxu1 %v601_v63 }
 0x1ab   : > { %876 = vmatmul.mubr.f32.vlgmr.msra.gmra.mxu1 %v594_v0 }
 0x227   : > { %v1041_v4 = vpop.f32.mrf.mxu1 }
 0x229   : > { %v1036_v6 = vpop.f32.mrf.mxu0  ;;  %v550_v9 = vpop.f32.mrf.mxu1 }
 0x22a   : > { %v556_v7 = vadd.f32 %v1041_v4, %v1036_v6 }
 0x22b   : > { %v472_v8 = vpop.f32.mrf.mxu0 }
 0x22c   : > { %v560_v10 = vsub.f32 0.0, %v556_v7  ;;  %v551_v11 = vadd.f32 %v550_v9, %v472_v8 }
 0x22e   : > { %v563_v12 = vmul.f32 1.442695, %v560_v10  ;;  %v559_v13 = vsub.f32 0.0, %v551_v11 }
 0x230   : > { %v561_v14 = vmul.f32 1.442695, %v559_v13  ;;  %1055 = vpow2.f32 %v563_v12 }
 0x232   : > { %1057 = vpow2.f32 %v561_v14 }
 0x23d   : > { %v1056_v15 = vpop.eup %1055 }
 0x23e   : > { %v566_v18 = vadd.f32 1.0, %v1056_v15 }
 0x23f   : > { %v1058_v16 = vpop.eup %1057 }
 0x240   : > { %v565_v17 = vadd.f32 1.0, %v1058_v16 }
 0x242   : > { %1059 = vrcp.f32 %v565_v17 }
 0x243   : > { %1061 = vrcp.f32 %v566_v18 }
 0x24f   : > { %v1060_v19 = vpop.eup %1059 }
 0x250   : > { %906 = vperm.xlu1 %1054, %v1060_v19   ;;  %v1062_v20 = vpop.eup %1061 }
 0x254   : > { %911 = vperm.xlu1 %1054, %v1062_v20  }
 0x269   : > { %v806_v25 = vpop.f32.mrf.mxu0 }
 0x26a   : > { %v807_v29 = vadd.f32 %v806_v25, %v739_v26 }
 0x26b   : > { %v808_v27 = vpop.f32.mrf.mxu0  ;;  %v877_v28 = vpop.f32.mrf.mxu1 }
 0x26c   : > { %v809_v30 = vadd.f32 %v808_v27, %v739_v26  ;;  %v878_v32 = vadd.f32 %v877_v28, %v807_v29 }
 0x26d   : > { %v879_v31 = vpop.f32.mrf.mxu1 }
 0x26e   : > { %v880_v33 = vadd.f32 %v879_v31, %v809_v30  ;;  %v882_v34 = vsub.f32 0.0, %v878_v32 }
 0x270   : > { %v883_v35 = vsub.f32 0.0, %v880_v33  ;;  %v884_v36 = vmul.f32 1.442695, %v882_v34 }
 0x272   : > { %v886_v37 = vmul.f32 1.442695, %v883_v35  ;;  %1063 = vpow2.f32 %v884_v36 }
 0x274   : > { %1065 = vpow2.f32 %v886_v37 }
 0x27f   : > { %v1064_v38 = vpop.eup %1063 }
 0x280   : > { %v888_v40 = vadd.f32 1.0, %v1064_v38 }
 0x281   : > { %v1066_v39 = vpop.eup %1065 }
 0x282   : > { %v889_v41 = vadd.f32 1.0, %v1066_v39  ;;  %1067 = vrcp.f32 %v888_v40 }
 0x284   : > { %1069 = vrcp.f32 %v889_v41 }
 0x28f   : > { %v1068_v42 = vpop.eup %1067 }
 0x290   : > { %v894_v44 = vadd.f32 1.0, %v1068_v42 }
 0x291   : > { %v1070_v43 = vpop.eup %1069 }
 0x292   : > { %v895_v45 = vadd.f32 1.0, %v1070_v43  ;;  %v899_v46 = vrot.slane %v894_v44, %v738_v23 }
 0x294   : > { %v903_v47 = vrot.slane %v895_v45, %v738_v23 }
 0x2cb   : > { %v907_v48 = vpop.permute.xlu1 %906 }
 0x2cc   : > { %v914_v49 = vadd.f32 %v907_v48, %v899_v46  ;;  %v915_v50 = vadd.f32 %v907_v48, %v903_v47 }
 0x2ce   : > { %v918_v51 = vmul.f32 %v914_v49, %v1135_v3  ;;  %v919_v52 = vmul.f32 %v915_v50, %v1139_v5 }
 0x2cf   : > { %v912_v53 = vpop.permute.xlu1 %911 }
 0x2d0   : > { %v922_v54 = vmax.f32 %v918_v51, 0.0  ;;  %v923_v55 = vmax.f32 %v919_v52, 0.0  ;;  %v916_v56 = vadd.f32 %v912_v53, %v899_v46  ;;  %v917_v57 = vadd.f32 %v912_v53, %v903_v47 }
 0x2d2   : > { %926 = vst [vmem:[%s226_s11] sm:$0xff] %v922_v54  ;;  %927 = vst [vmem:[%s226_s11 + $0x8] sm:$0xff] %v923_v55  ;;  %v920_v58 = vmul.f32 %v916_v56, %v1131_v1  ;;  %v921_v59 = vmul.f32 %v917_v57, %v1133_v2 }
 0x2d4   : > { %v924_v60 = vmax.f32 %v920_v58, 0.0  ;;  %v925_v3 = vmax.f32 %v921_v59, 0.0 }
 0x2d6   : > { %928 = vst [vmem:[%s226_s11 + $0x10] sm:$0xff] %v924_v60  ;;  %929 = vst [vmem:[%s226_s11 + $0x18] sm:$0xff] %v925_v3 }
 0x2d7 PF: > { %s17_s20 = sadd.s32 1, %s1077_s20  }
 0x2d8   : > { %p14_p4 = scmp.ge.s32.totalorder %s17_s20, 4  }
 0x2da   :  { %16 = sbr.rel (!%p14_p4) target bundleno = 3 (0x3), region = 70 }

</bundles_post_ra>
